<compile_context>
chip_gen: v6e
topology: v6e:2x2x1
jax: 0.10.0
libtpu: 0.0.40
codegen_flags: <defaults>
</compile_context>

<pallas_src>
import math
from functools import partial

import jax
import jax.numpy as jnp
from jax.experimental import pallas as pl
from jax.experimental.pallas import tpu as pltpu


def _block_kernel(x_ref, halo_ref, w_ref, b_ref, o_ref, *, eps, l_total):
    # x_ref    : (1, Cin, TL)    current length tile (channels on sublanes, length on lanes)
    # halo_ref : (1, 1, 2, Cin)  columns [t*TL - 1, (t+1)*TL] of x (zeros at sequence ends)
    # w_ref    : (3, Cout, Cin)  conv weight, tap-major, native dtype
    # b_ref    : (Cout, 1)       conv bias, f32
    # o_ref    : (1, Cout, TL)
    c_out = o_ref.shape[1]
    tl = o_ref.shape[2]

    x = x_ref[0]                                                    # (Cin, TL), native dtype
    col = jax.lax.broadcasted_iota(jnp.int32, (1, tl), 1)
    if l_total % tl != 0:
        # Ragged last tile: zero columns past the true length so they behave
        # exactly like the conv's zero padding (relies on Pallas padding of the
        # final partial block; only active for non-dividing explicit l_tile).
        gcol = col + pl.program_id(1) * tl
        x = jnp.where(gcol < l_total, x, jnp.zeros_like(x))

    # Conv1d taps as three aligned MXU matmuls (f32 accumulation).
    z0 = jnp.dot(w_ref[0], x, preferred_element_type=jnp.float32)   # needs column l-1
    z1 = jnp.dot(w_ref[1], x, preferred_element_type=jnp.float32)   # column l
    z2 = jnp.dot(w_ref[2], x, preferred_element_type=jnp.float32)   # needs column l+1

    # Cross-tile halo contributions for the first / last column of this tile.
    halo = halo_ref[0, 0].astype(jnp.float32)                       # (2, Cin)
    w0 = w_ref[0].astype(jnp.float32)                               # (Cout, Cin)
    w2 = w_ref[2].astype(jnp.float32)
    h0 = jnp.sum(w0 * halo[0:1, :], axis=1, keepdims=True)          # (Cout, 1)
    h2 = jnp.sum(w2 * halo[1:2, :], axis=1, keepdims=True)          # (Cout, 1)

    if tl % 128 == 0:
        # Lane-aligned tile: +/-1 column shifts on the XLU; the wrapped boundary
        # column is replaced by the halo contribution.
        left = jnp.where(col == 0, h0, pltpu.roll(z0, 1, 1))
        right = jnp.where(col == tl - 1, h2, pltpu.roll(z2, tl - 1, 1))
    else:
        # Small / lane-unaligned single tile: express the shifts as tiny one-hot
        # matmuls (robust lowering; only used when TL == L is small).
        row_i = jax.lax.broadcasted_iota(jnp.int32, (tl, tl), 0)
        col_i = jax.lax.broadcasted_iota(jnp.int32, (tl, tl), 1)
        s_prev = (row_i + 1 == col_i).astype(jnp.float32)           # picks z[:, l-1]
        s_next = (row_i == col_i + 1).astype(jnp.float32)           # picks z[:, l+1]
        left = jnp.dot(z0, s_prev, preferred_element_type=jnp.float32)
        left = left + jnp.where(col == 0, h0, 0.0)
        right = jnp.dot(z2, s_next, preferred_element_type=jnp.float32)
        right = right + jnp.where(col == tl - 1, h2, 0.0)

    y = left + z1 + right + b_ref[...]                              # (Cout, TL), f32

    # PixelNorm over channels: y / max(||y||, eps) * sqrt(Cout), via rsqrt (EUP).
    sumsq = jnp.sum(y * y, axis=0, keepdims=True)                   # (1, TL)
    inv = jax.lax.rsqrt(jnp.maximum(sumsq, jnp.float32(eps * eps)))
    y = y * (inv * jnp.float32(math.sqrt(c_out)))

    # SiLU; Dropout(p=0.0) is the identity (eval semantics).
    y = y * jax.nn.sigmoid(y)
    o_ref[0] = y.astype(o_ref.dtype)


def _choose_l_tile(L, c_in, c_out, itemsize):
    """Largest lane tile (multiple of 128 dividing L) whose working set fits a
    conservative VMEM budget; otherwise a single full-length tile."""
    def working_set(tl):
        return (2 * tl * (c_in + c_out) * itemsize            # x / out blocks, double buffered
                + 2 * (3 * c_out * c_in + c_out) * itemsize   # resident weights + bias
                + 8 * tl * c_out * 4)                         # f32 temporaries
    budget = 8 * 1024 * 1024  # fits default scoped VMEM on v5e (16M) and v6e/v7x (32M)
    if L % 128 != 0 or working_set(L) <= budget:
        # TODO(synk): very long L that is not a multiple of 128 (and huge channel
        # counts needing Cin/Cout tiling) fall back to a single large tile here.
        return L
    tl = 128
    while tl * 2 <= L and L % (tl * 2) == 0 and working_set(tl * 2) <= budget:
        tl *= 2
    return tl


def block_forward(x, weight, bias, *, eps=1e-4, l_tile=None):
    """Forward of `Block` in PyTorch layout.

    x      : (B, Cin, L)     (NCL)
    weight : (Cout, Cin, 3)  (PyTorch Conv1d weight)
    bias   : (Cout,)
    returns (B, Cout, L)
    """
    # TODO(synk): optional `mask` argument of the PyTorch forward is not plumbed
    # through (mask=None path implemented).
    B, c_in, L = x.shape
    c_out = weight.shape[0]

    if l_tile is None:
        l_tile = _choose_l_tile(L, c_in, c_out, x.dtype.itemsize)
    l_tile = min(int(l_tile), L)
    if l_tile != L and l_tile % 128 != 0:
        raise ValueError("l_tile must be a multiple of 128 or the full length")
    nt = pl.cdiv(L, l_tile)

    # Tap-major weight in the input dtype (MXU consumes it natively); f32 bias column.
    w_tap = jnp.transpose(weight, (2, 0, 1)).astype(x.dtype)        # (3, Cout, Cin)
    b_col = bias.astype(jnp.float32).reshape(c_out, 1)

    # Cross-tile halo: for tile t, columns [t*TL - 1, (t+1)*TL] of x (zero at the
    # sequence ends == the conv's zero padding). Two columns per tile, so this
    # replaces a full-array pad with negligible extra HBM traffic.
    if nt > 1:
        left_cols = x[:, :, l_tile - 1::l_tile][:, :, : nt - 1]     # (B, Cin, nt-1)
        right_cols = x[:, :, l_tile::l_tile][:, :, : nt - 1]        # (B, Cin, nt-1)
        zero_col = jnp.zeros((B, c_in, 1), x.dtype)
        left = jnp.concatenate([zero_col, left_cols], axis=2)       # (B, Cin, nt)
        right = jnp.concatenate([right_cols, zero_col], axis=2)     # (B, Cin, nt)
        halo = jnp.transpose(jnp.stack([left, right], axis=1), (0, 3, 1, 2))  # (B, nt, 2, Cin)
    else:
        halo = jnp.zeros((B, 1, 2, c_in), x.dtype)

    kernel = partial(_block_kernel, eps=eps, l_total=L)
    return pl.pallas_call(
        kernel,
        out_shape=jax.ShapeDtypeStruct((B, c_out, L), x.dtype),
        grid_spec=pltpu.PrefetchScalarGridSpec(
            num_scalar_prefetch=0,
            grid=(B, nt),
            in_specs=[
                pl.BlockSpec((1, c_in, l_tile), lambda b, t: (b, 0, t)),
                pl.BlockSpec((1, 1, 2, c_in), lambda b, t: (b, t, 0, 0)),
                pl.BlockSpec((3, c_out, c_in), lambda b, t: (0, 0, 0)),
                pl.BlockSpec((c_out, 1), lambda b, t: (0, 0)),
            ],
            out_specs=pl.BlockSpec((1, c_out, l_tile), lambda b, t: (b, 0, t)),
        ),
        compiler_params=pltpu.CompilerParams(
            dimension_semantics=("parallel", "parallel"),
            vmem_limit_bytes=32 * 1024 * 1024,
        ),
    )(x, halo, w_tap, b_col)


def _reference(x, weight, bias, *, eps=1e-4):
    """Plain-JAX reference matching the PyTorch module (sanity check)."""
    c_out = weight.shape[0]
    y = jax.lax.conv_general_dilated(
        x.astype(jnp.float32),
        weight.astype(jnp.float32),
        window_strides=(1,),
        padding=((1, 1),),
        dimension_numbers=("NCH", "OIH", "NCH"),
    ) + bias.astype(jnp.float32).reshape(1, c_out, 1)
    norm = jnp.sqrt(jnp.sum(y * y, axis=1, keepdims=True))
    y = y / jnp.maximum(norm, eps) * math.sqrt(c_out)
    return (y * jax.nn.sigmoid(y)).astype(x.dtype)


if __name__ == "__main__":
    key = jax.random.PRNGKey(0)

    configs = [
        # (B, dim, dim_out, L, l_tile)
        (2, 4, 8, 16, None),     # tiny: single lane-unaligned tile (one-hot-shift path)
        (2, 16, 32, 384, 128),   # tiled: 3 L-tiles of 128 with cross-tile halo + roll path
    ]
    for idx, (B, dim, dim_out, L, lt) in enumerate(configs):
        key, kx, kw, kb = jax.random.split(key, 4)
        x = jax.random.normal(kx, (B, dim, L), dtype=jnp.float32)
        # Deterministic Conv1d-style init: uniform(-1/sqrt(fan_in), +1/sqrt(fan_in)).
        fan_in = dim * 3
        bound = 1.0 / math.sqrt(fan_in)
        weight = jax.random.uniform(kw, (dim_out, dim, 3), jnp.float32, -bound, bound)
        bias = jax.random.uniform(kb, (dim_out,), jnp.float32, -bound, bound)

        out = jax.block_until_ready(block_forward(x, weight, bias, l_tile=lt))
        ref = _reference(x, weight, bias)
        assert out.shape == (B, dim_out, L)
        max_err = float(jnp.max(jnp.abs(out - ref)))
        assert jnp.allclose(out, ref, atol=2e-4, rtol=2e-4), (
            f"config {idx}: mismatch vs reference (max abs err {max_err})")

    print("KERNEL_OK")
</pallas_src>

<mosaic_0001>
module attributes {stable_mosaic.version = 11 : i64} {
  func.func @_block_kernel(%arg0: i32, %arg1: i32, %arg2: memref<1x4x16xf32, #tpu.memory_space<vmem>>, %arg3: memref<1x1x2x4xf32, #tpu.memory_space<vmem>>, %arg4: memref<3x8x4xf32, #tpu.memory_space<vmem>>, %arg5: memref<8x1xf32, #tpu.memory_space<vmem>>, %arg6: memref<1x8x16xf32, #tpu.memory_space<vmem>>) attributes {dimension_semantics = [#tpu.dimension_semantics<parallel>, #tpu.dimension_semantics<parallel>], iteration_bounds = array<i64: 2, 1>, scalar_prefetch = 0 : i64, scratch_operands = 0 : i64, tpu.core_type = #tpu.core_type<tc>, window_params = [{transform_indices = @transform_0, window_bounds = array<i64: 1, 4, 16>}, {transform_indices = @transform_1, window_bounds = array<i64: 1, 1, 2, 4>}, {pipeline_mode = #tpu.pipeline_mode<synchronous>, transform_indices = @transform_2, window_bounds = array<i64: 3, 8, 4>}, {pipeline_mode = #tpu.pipeline_mode<synchronous>, transform_indices = @transform_3, window_bounds = array<i64: 8, 1>}, {transform_indices = @transform_4, window_bounds = array<i64: 1, 8, 16>}]} {
    %c0 = arith.constant 0 : index
    %c0_0 = arith.constant 0 : index
    %c0_1 = arith.constant 0 : index
    %0 = vector.load %arg2[%c0, %c0_0, %c0_1] : memref<1x4x16xf32, #tpu.memory_space<vmem>>, vector<1x4x16xf32>
    %1 = vector.shape_cast %0 : vector<1x4x16xf32> to vector<4x16xf32>
    %2 = tpu.iota {dimensions = array<i32: 1>} : vector<1x16xi32>
    %c0_2 = arith.constant 0 : index
    %c0_3 = arith.constant 0 : index
    %c0_4 = arith.constant 0 : index
    %3 = vector.load %arg4[%c0_2, %c0_3, %c0_4] : memref<3x8x4xf32, #tpu.memory_space<vmem>>, vector<1x8x4xf32>
    %4 = vector.shape_cast %3 : vector<1x8x4xf32> to vector<8x4xf32>
    %cst = arith.constant dense<0.000000e+00> : vector<8x16xf32>
    %5 = tpu.matmul %4, %1, %cst {dimension_numbers = #tpu.dot_dimension_numbers<[1], [0], [0], [1], [0, 0, 1, 1], [], []>} : vector<8x4xf32>, vector<4x16xf32>, vector<8x16xf32> -> vector<8x16xf32>
    %c1 = arith.constant 1 : index
    %c0_5 = arith.constant 0 : index
    %c0_6 = arith.constant 0 : index
    %6 = vector.load %arg4[%c1, %c0_5, %c0_6] : memref<3x8x4xf32, #tpu.memory_space<vmem>>, vector<1x8x4xf32>
    %7 = vector.shape_cast %6 : vector<1x8x4xf32> to vector<8x4xf32>
    %cst_7 = arith.constant dense<0.000000e+00> : vector<8x16xf32>
    %8 = tpu.matmul %7, %1, %cst_7 {dimension_numbers = #tpu.dot_dimension_numbers<[1], [0], [0], [1], [0, 0, 1, 1], [], []>} : vector<8x4xf32>, vector<4x16xf32>, vector<8x16xf32> -> vector<8x16xf32>
    %c2 = arith.constant 2 : index
    %c0_8 = arith.constant 0 : index
    %c0_9 = arith.constant 0 : index
    %9 = vector.load %arg4[%c2, %c0_8, %c0_9] : memref<3x8x4xf32, #tpu.memory_space<vmem>>, vector<1x8x4xf32>
    %10 = vector.shape_cast %9 : vector<1x8x4xf32> to vector<8x4xf32>
    %cst_10 = arith.constant dense<0.000000e+00> : vector<8x16xf32>
    %11 = tpu.matmul %10, %1, %cst_10 {dimension_numbers = #tpu.dot_dimension_numbers<[1], [0], [0], [1], [0, 0, 1, 1], [], []>} : vector<8x4xf32>, vector<4x16xf32>, vector<8x16xf32> -> vector<8x16xf32>
    %c0_11 = arith.constant 0 : index
    %c0_12 = arith.constant 0 : index
    %c0_13 = arith.constant 0 : index
    %c0_14 = arith.constant 0 : index
    %12 = vector.load %arg3[%c0_11, %c0_12, %c0_13, %c0_14] : memref<1x1x2x4xf32, #tpu.memory_space<vmem>>, vector<1x1x2x4xf32>
    %13 = vector.shape_cast %12 : vector<1x1x2x4xf32> to vector<2x4xf32>
    %c0_15 = arith.constant 0 : index
    %c0_16 = arith.constant 0 : index
    %c0_17 = arith.constant 0 : index
    %14 = vector.load %arg4[%c0_15, %c0_16, %c0_17] : memref<3x8x4xf32, #tpu.memory_space<vmem>>, vector<1x8x4xf32>
    %15 = vector.shape_cast %14 : vector<1x8x4xf32> to vector<8x4xf32>
    %c2_18 = arith.constant 2 : index
    %c0_19 = arith.constant 0 : index
    %c0_20 = arith.constant 0 : index
    %16 = vector.load %arg4[%c2_18, %c0_19, %c0_20] : memref<3x8x4xf32, #tpu.memory_space<vmem>>, vector<1x8x4xf32>
    %17 = vector.shape_cast %16 : vector<1x8x4xf32> to vector<8x4xf32>
    %18 = vector.extract_strided_slice %13 {offsets = [0, 0], sizes = [1, 4], strides = [1, 1]} : vector<2x4xf32> to vector<1x4xf32>
    %19 = vector.broadcast %18 : vector<1x4xf32> to vector<8x4xf32>
    %20 = arith.mulf %15, %19 : vector<8x4xf32>
    %cst_21 = arith.constant dense<0.000000e+00> : vector<8xf32>
    %21 = vector.multi_reduction <add>, %20, %cst_21 [1] : vector<8x4xf32> to vector<8xf32>
    %22 = vector.shape_cast %21 : vector<8xf32> to vector<8x1xf32>
    %23 = vector.extract_strided_slice %13 {offsets = [1, 0], sizes = [1, 4], strides = [1, 1]} : vector<2x4xf32> to vector<1x4xf32>
    %24 = vector.broadcast %23 : vector<1x4xf32> to vector<8x4xf32>
    %25 = arith.mulf %17, %24 : vector<8x4xf32>
    %cst_22 = arith.constant dense<0.000000e+00> : vector<8xf32>
    %26 = vector.multi_reduction <add>, %25, %cst_22 [1] : vector<8x4xf32> to vector<8xf32>
    %27 = vector.shape_cast %26 : vector<8xf32> to vector<8x1xf32>
    %28 = tpu.iota {dimensions = array<i32: 0>} : vector<16x16xi32>
    %29 = tpu.iota {dimensions = array<i32: 1>} : vector<16x16xi32>
    %c1_i32 = arith.constant 1 : i32
    %30 = vector.broadcast %c1_i32 : i32 to vector<16x16xi32>
    %31 = arith.addi %28, %30 : vector<16x16xi32>
    %32 = arith.cmpi eq, %31, %29 : vector<16x16xi32>
    %33 = arith.extui %32 : vector<16x16xi1> to vector<16x16xi32>
    %34 = arith.sitofp %33 : vector<16x16xi32> to vector<16x16xf32>
    %c1_i32_23 = arith.constant 1 : i32
    %35 = vector.broadcast %c1_i32_23 : i32 to vector<16x16xi32>
    %36 = arith.addi %29, %35 : vector<16x16xi32>
    %37 = arith.cmpi eq, %28, %36 : vector<16x16xi32>
    %38 = arith.extui %37 : vector<16x16xi1> to vector<16x16xi32>
    %39 = arith.sitofp %38 : vector<16x16xi32> to vector<16x16xf32>
    %cst_24 = arith.constant dense<0.000000e+00> : vector<8x16xf32>
    %40 = tpu.matmul %5, %34, %cst_24 {dimension_numbers = #tpu.dot_dimension_numbers<[1], [0], [0], [1], [0, 0, 1, 1], [], []>} : vector<8x16xf32>, vector<16x16xf32>, vector<8x16xf32> -> vector<8x16xf32>
    %c0_i32 = arith.constant 0 : i32
    %41 = vector.broadcast %c0_i32 : i32 to vector<1x16xi32>
    %42 = arith.cmpi eq, %2, %41 : vector<1x16xi32>
    %cst_25 = arith.constant 0.000000e+00 : f32
    %43 = vector.shape_cast %42 : vector<1x16xi1> to vector<1x16xi1>
    %44 = vector.broadcast %43 : vector<1x16xi1> to vector<8x16xi1>
    %45 = vector.shape_cast %22 : vector<8x1xf32> to vector<8x1xf32>
    %46 = vector.broadcast %45 : vector<8x1xf32> to vector<8x16xf32>
    %47 = vector.broadcast %cst_25 : f32 to vector<8x16xf32>
    %48 = arith.select %44, %46, %47 : vector<8x16xi1>, vector<8x16xf32>
    %49 = arith.addf %40, %48 : vector<8x16xf32>
    %cst_26 = arith.constant dense<0.000000e+00> : vector<8x16xf32>
    %50 = tpu.matmul %11, %39, %cst_26 {dimension_numbers = #tpu.dot_dimension_numbers<[1], [0], [0], [1], [0, 0, 1, 1], [], []>} : vector<8x16xf32>, vector<16x16xf32>, vector<8x16xf32> -> vector<8x16xf32>
    %c15_i32 = arith.constant 15 : i32
    %51 = vector.broadcast %c15_i32 : i32 to vector<1x16xi32>
    %52 = arith.cmpi eq, %2, %51 : vector<1x16xi32>
    %cst_27 = arith.constant 0.000000e+00 : f32
    %53 = vector.shape_cast %52 : vector<1x16xi1> to vector<1x16xi1>
    %54 = vector.broadcast %53 : vector<1x16xi1> to vector<8x16xi1>
    %55 = vector.shape_cast %27 : vector<8x1xf32> to vector<8x1xf32>
    %56 = vector.broadcast %55 : vector<8x1xf32> to vector<8x16xf32>
    %57 = vector.broadcast %cst_27 : f32 to vector<8x16xf32>
    %58 = arith.select %54, %56, %57 : vector<8x16xi1>, vector<8x16xf32>
    %59 = arith.addf %50, %58 : vector<8x16xf32>
    %60 = arith.addf %49, %8 : vector<8x16xf32>
    %61 = arith.addf %60, %59 : vector<8x16xf32>
    %c0_28 = arith.constant 0 : index
    %c0_29 = arith.constant 0 : index
    %62 = vector.load %arg5[%c0_28, %c0_29] : memref<8x1xf32, #tpu.memory_space<vmem>>, vector<8x1xf32>
    %63 = vector.broadcast %62 : vector<8x1xf32> to vector<8x16xf32>
    %64 = arith.addf %61, %63 : vector<8x16xf32>
    %65 = arith.mulf %64, %64 : vector<8x16xf32>
    %cst_30 = arith.constant dense<0.000000e+00> : vector<16xf32>
    %66 = vector.multi_reduction <add>, %65, %cst_30 [0] : vector<8x16xf32> to vector<16xf32>
    %67 = vector.shape_cast %66 : vector<16xf32> to vector<1x16xf32>
    %cst_31 = arith.constant 9.99999993E-9 : f32
    %68 = vector.broadcast %cst_31 : f32 to vector<1x16xf32>
    %69 = arith.maximumf %67, %68 : vector<1x16xf32>
    %70 = math.rsqrt %69 : vector<1x16xf32>
    %cst_32 = arith.constant 2.82842708 : f32
    %71 = vector.broadcast %cst_32 : f32 to vector<1x16xf32>
    %72 = arith.mulf %70, %71 : vector<1x16xf32>
    %73 = vector.broadcast %72 : vector<1x16xf32> to vector<8x16xf32>
    %74 = arith.mulf %64, %73 : vector<8x16xf32>
    %75 = arith.negf %74 : vector<8x16xf32>
    %76 = math.exp %75 : vector<8x16xf32>
    %cst_33 = arith.constant 1.000000e+00 : f32
    %77 = vector.broadcast %cst_33 : f32 to vector<8x16xf32>
    %78 = arith.addf %77, %76 : vector<8x16xf32>
    %79 = arith.divf %77, %78 : vector<8x16xf32>
    %80 = arith.mulf %74, %79 : vector<8x16xf32>
    %c0_34 = arith.constant 0 : index
    %c0_35 = arith.constant 0 : index
    %c0_36 = arith.constant 0 : index
    %81 = vector.load %arg6[%c0_34, %c0_35, %c0_36] : memref<1x8x16xf32, #tpu.memory_space<vmem>>, vector<1x8x16xf32>
    %82 = vector.shape_cast %81 : vector<1x8x16xf32> to vector<8x16xf32>
    %83 = vector.shape_cast %80 : vector<8x16xf32> to vector<1x8x16xf32>
    tpu.vector_store %arg6[%c0_34, %c0_35, %c0_36], %83 {strides = array<i32>} : memref<1x8x16xf32, #tpu.memory_space<vmem>>, vector<1x8x16xf32>,
    return
  }
  func.func @transform_0(%arg0: i32, %arg1: i32) -> (i32, i32, i32) {
    %c0_i32 = arith.constant 0 : i32
    %c0_i32_0 = arith.constant 0 : i32
    return %arg0, %c0_i32, %arg1 : i32, i32, i32
  }
  func.func @transform_1(%arg0: i32, %arg1: i32) -> (i32, i32, i32, i32) {
    %c0_i32 = arith.constant 0 : i32
    %c0_i32_0 = arith.constant 0 : i32
    %c0_i32_1 = arith.constant 0 : i32
    return %arg0, %arg1, %c0_i32, %c0_i32_0 : i32, i32, i32, i32
  }
  func.func @transform_2(%arg0: i32, %arg1: i32) -> (i32, i32, i32) {
    %c0_i32 = arith.constant 0 : i32
    %c0_i32_0 = arith.constant 0 : i32
    %c0_i32_1 = arith.constant 0 : i32
    %c0_i32_2 = arith.constant 0 : i32
    return %c0_i32, %c0_i32_0, %c0_i32_1 : i32, i32, i32
  }
  func.func @transform_3(%arg0: i32, %arg1: i32) -> (i32, i32) {
    %c0_i32 = arith.constant 0 : i32
    %c0_i32_0 = arith.constant 0 : i32
    %c0_i32_1 = arith.constant 0 : i32
    return %c0_i32, %c0_i32_0 : i32, i32
  }
  func.func @transform_4(%arg0: i32, %arg1: i32) -> (i32, i32, i32) {
    %c0_i32 = arith.constant 0 : i32
    %c0_i32_0 = arith.constant 0 : i32
    return %arg0, %c0_i32, %arg1 : i32, i32, i32
  }
}

</mosaic_0001>

<bundles_post_ra>
// kernel: tpu_custom_call.1
= control target key start
LH: loop header
LB: loop body
LE: loop exit
PB: predicated region body
PF: predicated region fallthrough
CT: control target
= control target key end

     0   :  { %9 = vsyncpa [#allocation3], 0  ;;  %s1184_s0 = inlined_call_operand.vmem [shape: f32[2,4,16], index: 0, kind: input, shape index: {}]   ;;  %s1185_s1 = inlined_call_operand.vmem [shape: f32[2,1,2,4], index: 1, kind: input, shape index: {}]   ;;  %s1186_s2 = inlined_call_operand.vmem [shape: f32[3,8,4], index: 2, kind: input, shape index: {}]   ;;  %s1187_s3 = inlined_call_operand.vmem [shape: f32[8,1], index: 3, kind: input, shape index: {}]   ;;  %s1188_s4 = inlined_call_operand.hbm [shape: f32[2,8,16], index: 4, kind: output, shape index: {}]  }
   0x1   :  { %11 = vsyncpa [#allocation3 + $0x1], 0  ;;  %s1045_s15 = smov 0   ;;  %s1047_s16 = smov 0  }
   0x2   :  { %s1049_s17 = smov 0   ;;  %s1051_s18 = smov 0  }
   0x3   :  { %s1053_s19 = smov 0   ;;  %s1055_s20 = smov 0  }
   0x4 LB: > { %s798_s21 = sadd.s32 4294967295, %s1013_s20   ;;  %s799_s22 = sadd.s32 4294967294, %s1013_s20   ;;  %s1013_s20 = sphi %s1055_s20, %s17_s20   ;;  %s1009_s19 = sphi %s1053_s19, %s1195_s19   ;;  %s1005_s18 = sphi %s1051_s18, %s1194_s18   ;;  %s1001_s17 = sphi %s1049_s17, %s1193_s17   ;;  %s997_s16 = sphi %s1047_s16, %s1192_s16   ;;  %s993_s15 = sphi %s1045_s15, %s1191_s15  }
   0x5   : > { %s29_s23 = sadd.s32 1, %s1009_s19  ;;  %s136_s24 = sadd.s32 1, %s1001_s17 }
   0x6   : > { %p31_p0 = scmp.ge.s32.totalorder %s29_s23, 2  ;;  %p146_p1 = scmp.ne.s32.totalorder %s1001_s17, %s997_s16 }
   0x7   : > { %p147_p2 = scmp.eq.s32.totalorder %s798_s21, 1  ;;  %p152_p3 = scmp.ne.s32.totalorder %s997_s16, %s993_s15 }
   0x8   : > { %s1197_s23 = smov (%p31_p0, %s29_s23), 0  ;;  %p153_p5 = scmp.eq.s32.totalorder %s799_s22, 1 }
   0x9   : > { %p1085_p4 = por %p147_p2, %p146_p1  ;;  %s131_s26 = ssub.s32 %s1009_s19, %s1197_s23 }
   0xa   : > { %p802_p6 = scmp.ge.s32.totalorder %s1013_s20, 1  ;;  %p134_p7 = scmp.eq.s32.totalorder %s131_s26, 0 }
   0xb   : > { %p1092_p8 = por %p153_p5, %p152_p3  ;;  %p197_p9 = scmp.lt.s32.totalorder %s1013_s20, 3 }
   0xc   : > { %s1098_s28 = scalar_select %p134_p7, %s1001_s17, %s136_s24  }
   0xd   : > { %p198_p10 = pnand %p802_p6, %p197_p9 }
   0xe   : > { %p232_p11 = scmp.lt.s32.totalorder (!%p198_p10), %s1005_s18, 1  ;;  %s826_s6 = sshll.u32 (!%p198_p10), %s1005_s18, 7 }
   0xf   : > { %201 = sbr.rel (%p198_p10) target bundleno = 504 (0x1f8), region = 36  ;;  %s710_s11 = scalar_lea.hbm (!%p198_p10), %s1188_s4, %s826_s6 }
  0x14   : > { %v1015_v0 = vmov 0.0   ;;  %vm1016_vm0 = vmmov 0   ;;  %v247_v1 = vlaneseq  ;;  %s1103_s29 = scalar_select %p232_p11, %s1005_s18, 1  ;;  %vm254_vm1 = vcmask 1043456   ;;  %v249_v3 = vld [vmem:[%s1186_s2] sm:$0xff]  ;;  %v808_v7 = vld [vmem:[%s1186_s2 + $0x8] sm:$0xff] }
  0x15   : > { %841 = vmatprep.subr.mxu0 %v1015_v0  ;;  %843 = vmatprep.mubr.msk.f32.mxu0 %vm1016_vm0, %v1015_v0  ;;  %vm250_vm2 = vcmask 31744   ;;  %v811_v9 = vld [vmem:[%s1186_s2 + $0x10] sm:$0xff]  ;;  %v1017_v10 = vmov 1.0   ;;  %v670_v15 = vld [vmem:[%s1187_s3] sm:$0xff]  ;;  %v1018_v16 = vmov 0   ;;  %vm517_vm7 = vcmask 130048  }
  0x16   : > { %846 = vmatprep.subr.mxu1 %v1015_v0  ;;  %848 = vmatprep.mubr.msk.f32.mxu1 %vm1016_vm0, %v1015_v0  ;;  %v480_v2 = vshrl.u32 %v247_v1, 7  ;;  %s804_s30 = sshll.u32 %s1103_s29, 2  ;;  %v1113_v4 = vand.u32 127, %v247_v1  ;;  %s805_s14 = sshll.u32 %s1103_s29, 1 }
  0x17   : > { %s238_s7 = scalar_lea.vmem %s1184_s0, %s804_s30  ;;  %s245_s30 = scalar_lea.vmem %s1185_s1, %s805_s14  ;;  %929 = vset.pattern.permute.xlu1 %v1018_v16  ;;  %930 = vset.pattern.permute.xlu0 %v1018_v16 }
  0x18   : > { %v497_v5 = vadd.s32 8, %v480_v2  ;;  %v246_v6 = vld [vmem:[%s238_s7] sm:$0xf]  ;;  %v498_v11 = vadd.s32 1, %v480_v2  ;;  %v506_v12 = vadd.s32 1, %v1113_v4  ;;  %v481_v13 = vsub.s32 0, %v480_v2  ;;  %673 = vperm.xlu1 %929, %v670_v15  }
  0x19   : > { %842 = vmatpush3.msk.msra.mxu0 %vm254_vm1, %v246_v6  ;;  %847 = vmatpush3.msk.msra.mxu1 %vm254_vm1, %v246_v6  ;;  %v489_v14 = vsub.s32 1, %v480_v2  ;;  %v478_v17 = vld [vmem:[%s245_s30] sm:$0x3]  ;;  %vm513_vm8 = vcmp.eq.s32.totalorder %v1113_v4, 0  ;;  %vm591_vm9 = vcmp.eq.s32.totalorder %v1113_v4, 15  ;;  %s229_s29 = sand.u32 1, %s997_s16  }
  0x1a   : > { %v499_v8 = vadd.s32 1, %v497_v5  ;;  %844 = vmatmul.mubr.msk.f32.vlgmr.msra.gmra.mxu0 %vm250_vm2, %v249_v3  ;;  %851 = vmatprep.subr.mxu0 %v1015_v0  ;;  %vm500_vm4 = vcmp.eq.s32.totalorder %v498_v11, %v1113_v4  ;;  %vm508_vm5 = vcmp.eq.s32.totalorder %v497_v5, %v506_v12  ;;  %vm507_vm6 = vcmp.eq.s32.totalorder %v480_v2, %v506_v12  ;;  %s803_s5 = sshll.u32 %s229_s29, 3  ;;  %s698_s12 = scalar_lea.sflag [#allocation3], %s229_s29 }
  0x1b   : > { %852 = vmatpush3.msk.msra.mxu0 %vm254_vm1, %v246_v6  ;;  %853 = vmatprep.mubr.msk.f32.mxu0 %vm1016_vm0, %v1015_v0  ;;  %v482_v18 = vrot.slane %v478_v17, %v481_v13  ;;  %v490_v19 = vrot.slane %v478_v17, %v489_v14  ;;  %s231_s7 = scalar_lea.vmem [#allocation2], %s803_s5  ;;  %s1019_s14 = smov [#allocation2]  }
  0x1c   : > { %vm501_vm3 = vcmp.eq.s32.totalorder %v499_v8, %v1113_v4  ;;  %849 = vmatmul.mubr.msk.f32.vlgmr.msra.gmra.mxu1 %vm250_vm2, %v808_v7  ;;  %856 = vmatprep.subr.mxu1 %v1015_v0  ;;  %s712_s8 = sshll.u32 %s231_s7, 4  ;;  %s941_s21 = sshll.u32 %s1019_s14, 4  ;;  %s713_s8 = int_to_ptr.vmem [resolvable:$true] %s712_s8  ;;  %s942_s21 = int_to_ptr.vmem [resolvable:$false] %s941_s21 }
  0x1d   : > { %857 = vmatpush3.msk.msra.mxu1 %vm501_vm3, %v1017_v10  ;;  %860 = vmatprep.mubr.msk.f32.mxu1 %vm1016_vm0, %v1015_v0  ;;  %v483_v20 = vmul.f32 %v482_v18, %v249_v3  ;;  %v491_v21 = vmul.f32 %v811_v9, %v490_v19  ;;  %s937_s13 = scalar_lea.vmem %s713_s8, 128  ;;  %s943_s18 = scalar_lea.vmem %s942_s21, 256 }
  0x1e   : > { %854 = vmatmul.mubr.msk.f32.vlgmr.msra.gmra.mxu0 %vm250_vm2, %v811_v9  ;;  %858 = vmatprep.subr.mxu1 %v1015_v0  ;;  %p938_p12 = scmp.ne.s32.totalorder %s713_s8, %s937_s13  ;;  %p944_p1 = scmp.lt.s32.totalorder %s713_s8, %s942_s21 }
  0x1f   : > { %863 = vmatprep.subr.mxu0 %v1015_v0  ;;  %867 = vmatprep.mubr.msk.f32.mxu0 %vm1016_vm0, %v1015_v0  ;;  %v484_v22 = vsel %vm250_vm2, %v483_v20, 0.0  ;;  %v492_v23 = vsel %vm250_vm2, %v491_v21, 0.0  ;;  %p945_p2 = scmp.lt.s32.totalorder %s943_s18, %s937_s13 }
  0x20   : > { %859 = vmatpush3.msk.msra.mxu1 %vm500_vm4, %v1017_v10  ;;  %864 = vmatpush3.msk.msra.mxu0 %vm508_vm5, %v1017_v10  ;;  %p939_p13 = pnand %p938_p12, %p1085_p4 }
  0x21   : > { %865 = vmatprep.subr.mxu0 %v1015_v0  ;;  %485 = vadd.xlane.f32.xlu0 %v484_v22  ;;  %p946_p3 = por %p945_p2, %p944_p1 }
  0x22   : > { %866 = vmatpush3.msk.msra.mxu0 %vm507_vm6, %v1017_v10  ;;  %p940_p0 = pneg %p939_p13 }
  0x24   : > { %p947_p5 = pnand %p946_p3, %p940_p0 }
  0x25   : > { %493 = vadd.xlane.f32.xlu0 %v492_v23 }
  0x93   : > { %v674_v41 = vpop.permute.xlu1 %673 }
  0xaa   : > { %v486_v30 = vpop.xlane.xlu0 %485 }
  0xab   : > { %v516_v31 = vsel %vm513_vm8, %v486_v30, 0.0 }
  0xae   : > { %v494_v32 = vpop.xlane.xlu0 %493 }
  0xaf   : > { %v594_v36 = vsel %vm591_vm9, %v494_v32, 0.0 }
  0xda   : > { %v324_v24 = vpop.f32.mrf.mxu0 }
  0xdb   : > { %861 = vmatmul.mubr.msk.f32.vlgmr.msra.gmra.mxu1 %vm517_vm7, %v324_v24 }
  0xdc   : > { %v845_v25 = vpop.f32.mrf.mxu0  ;;  %v399_v26 = vpop.f32.mrf.mxu1 }
  0xde   : > { %v474_v27 = vpop.f32.mrf.mxu0  ;;  %v850_v28 = vpop.f32.mrf.mxu1 }
  0xdf   : > { %868 = vmatmul.mubr.msk.f32.vlgmr.msra.gmra.mxu0 %vm517_vm7, %v474_v27 }
  0xe0   : > { %v855_v29 = vpop.f32.mrf.mxu0 }
 0x19b   : > { %v587_v33 = vpop.f32.mrf.mxu1 }
 0x19c   : > { %v588_v34 = vadd.f32 %v587_v33, %v516_v31 }
 0x19d   : > { %v862_v35 = vpop.f32.mrf.mxu1 }
 0x19e   : > { %v668_v38 = vadd.f32 %v588_v34, %v399_v26 }
 0x19f   : > { %v664_v37 = vpop.f32.mrf.mxu0 }
 0x1a0   : > { %v665_v39 = vadd.f32 %v664_v37, %v594_v36 }
 0x1a1   : > { %v869_v40 = vpop.f32.mrf.mxu0 }
 0x1a2   : > { %v669_v42 = vadd.f32 %v668_v38, %v665_v39 }
 0x1a4   : > { %v676_v43 = vadd.f32 %v674_v41, %v669_v42 }
 0x1a6   : > { %v677_v44 = vmul.f32 %v676_v43, %v676_v43 }
 0x1a8   : > { %v678_v45 = vsel %vm517_vm7, %v677_v44, 0.0 }
 0x1a9   : > { %v679_v46 = vrot.slane %v678_v45, 4 }
 0x1ab   : > { %v680_v47 = vadd.f32 %v679_v46, %v678_v45 }
 0x1ad   : > { %v681_v48 = vrot.slane %v680_v47, 2 }
 0x1af   : > { %v682_v49 = vadd.f32 %v681_v48, %v680_v47 }
 0x1b1   : > { %v683_v50 = vrot.slane %v682_v49, 1 }
 0x1b3   : > { %v684_v51 = vadd.f32 %v683_v50, %v682_v49 }
 0x1b5   : > { %v685_v52 = vmax.f32 %v684_v51, 1e-08 }
 0x1b7   : > { %931 = vrsqrt.f32 %v685_v52 }
 0x1c4   : > { %v932_v53 = vpop.eup %931 }
 0x1c5   : > { %v687_v54 = vmul.f32 2.828427, %v932_v53 }
 0x1c7   : > { %v688_v55 = vmul.f32 %v687_v54, %v676_v43 }
 0x1c9   : > { %v824_v56 = vmul.f32 -1.442695, %v688_v55 }
 0x1cb   : > { %933 = vpow2.f32 %v824_v56 }
 0x1d8   : > { %v934_v57 = vpop.eup %933 }
 0x1d9   : > { %v692_v58 = vadd.f32 1.0, %v934_v57 }
 0x1db   : > { %935 = vrcp.f32 %v692_v58 }
 0x1e8   : > { %v936_v59 = vpop.eup %935 }
 0x1e9   : > { %v695_v60 = vmul.f32 %v936_v59, %v688_v55 }
 0x1eb   : > { %696 = vst.msk [vmem:[%s231_s7] sm:$0xff] %vm517_vm7, %v695_v60 }
 0x1ec   : > { %950 = shalt.err (!%p947_p5)
}
 0x1ed   : > { %s951_s22 = scalar_lea.hbm %s710_s11, 128  ;;  %s955_s30 = scalar_lea.hbm %s1188_s4, 256 }
 0x1ee   : > { %p952_p6 = scmp.ne.s32.totalorder %s710_s11, %s951_s22  ;;  %p956_p10 = scmp.lt.s32.totalorder %s710_s11, %s1188_s4 }
 0x1ef   : > { %p957_p11 = scmp.lt.s32.totalorder %s955_s30, %s951_s22 }
 0x1f0   : > { %p953_p7 = pnand %p952_p6, %p1085_p4 }
 0x1f1   : > { %p958_p12 = por %p957_p11, %p956_p10 }
 0x1f2   : > { %p954_p9 = pneg %p953_p7 }
 0x1f4   : > { %p959_p13 = pnand %p958_p12, %p954_p9 }
 0x1f6   : > { %962 = shalt.err (!%p959_p13)
}
 0x1f7   : > { %870 = dma.vmem_to_hbm [thread:$0]  (%p1085_p4), %s713_s8, 128, %s710_s11, %s698_s12  }
 0x1f8 PF: > { %p876_p0 = scmp.ge.s32.totalorder %s1013_s20, 2  ;;  %s724_s6 = sand.u32 1, %s993_s15  }
 0x1f9   : > { %s725_s7 = scalar_lea.sflag [#allocation3], %s724_s6 }
 0x1fa   : > { %p873_p1 = pnand %p876_p0, %p1092_p8 }
 0x1fc   : > { %p874_p2 = pneg %p873_p1 }
 0x1fe   : > { %988 = dma.done.wait (%p874_p2), %s725_s7, 128  }
 0x1ff   : > { %990 = vsyncadd (%p874_p2), %s725_s7, 4294967168  ;;  %s17_s20 = sadd.s32 1, %s1013_s20   ;;  %s1191_s15 = smov %s997_s16 }
 0x200   : > { %p14_p3 = scmp.ge.s32.totalorder %s17_s20, 4   ;;  %s1192_s16 = smov %s1001_s17 }
 0x201   : > { %s1193_s17 = smov %s1098_s28  ;;  %s1194_s18 = smov %s1009_s19 }
 0x202   : > { %s1195_s19 = smov %s1197_s23  ;;  %16 = sbr.rel (!%p14_p3) target bundleno = 4 (0x4), region = 76 }
 0x207   :  { %730 = vsyncpa [#allocation3], 1 }
 0x208   :  { %732 = vsyncpa [#allocation3 + $0x1], 1 }

</bundles_post_ra>
